<compile_context>
chip_gen: v7x
topology: tpu7x:2x2x1
jax: 0.10.0
libtpu: 0.0.40
codegen_flags: <defaults>
</compile_context>

<pallas_src>
import jax
import jax.numpy as jnp
from jax.experimental import pallas as pl
from jax.experimental.pallas import tpu as pltpu

NEGATIVE_SLOPE = -0.1
C_IN, C_MID, C_OUT = 2, 3, 4

# Per-grid-step sizing: ~256K L-positions/step => 24B * 256K = 6 MiB of HBM
# traffic per step and 48B * 256K = 12 MiB of double-buffered VMEM, which fits
# every generation's scoped-VMEM budget (incl. v7x's 64 MiB physical VMEM).
_TARGET_POSITIONS_PER_STEP = 256 * 1024


def _fused_kernel(x_ref, wv_ref, bv_ref, o_ref):
    # x_ref:  (nb, C_IN, lt)  VMEM      wv_ref: (C_IN, C_OUT, 1) VMEM (folded W1@W2)
    # bv_ref: (C_OUT, 1)      VMEM      o_ref:  (nb, C_OUT, lt)  VMEM
    x = x_ref[...]                       # (nb, C_IN, lt)
    wv = wv_ref[...]                     # (C_IN, C_OUT, 1)
    bv = bv_ref[...]                     # (C_OUT, 1)

    # One broadcasted MAC chain building the full (nb, C_OUT, lt) tile:
    #   x[:, ci:ci+1, :] (nb,1,lt) broadcasts along sublanes (output channels),
    #   wv[ci][None]     (1,C_OUT,1) broadcasts along lanes (L positions).
    acc = x[:, 0:1, :] * wv[0][None] + bv[None]          # (nb, C_OUT, lt)
    for ci in range(1, C_IN):
        acc = acc + x[:, ci:ci + 1, :] * wv[ci][None]

    # torch.where(t2 > 0, t2, t2 * negative_slope), single dense store.
    o_ref[...] = jnp.where(acc > 0, acc, acc * NEGATIVE_SLOPE)


def _pick_l_tile(l_pad, max_positions):
    """Largest multiple of 128 that divides l_pad and is <= max_positions."""
    m = l_pad // 128
    cap = max(1, min(m, max_positions // 128))
    for d in range(cap, 0, -1):
        if m % d == 0:
            return d * 128
    return 128


def _choose_tiling(n, l_pad):
    lt = _pick_l_tile(l_pad, _TARGET_POSITIONS_PER_STEP)
    nb = 1
    if lt == l_pad:
        # Block over batch too: with lt == L_pad the (nb, C, L) slab is fully
        # contiguous in NCL row-major layout -> one long DMA burst per step.
        for d in range(n, 0, -1):
            if n % d == 0 and d * lt <= _TARGET_POSITIONS_PER_STEP:
                nb = d
                break
    # v7x has 2 TensorCores per chip: keep >= 2 grid steps when possible.
    if (n // nb) * (l_pad // lt) < 2:
        if nb > 1:
            for d in range(n // 2, 0, -1):
                if n % d == 0:
                    nb = d
                    break
        else:
            lt = _pick_l_tile(l_pad, max(128, lt // 2))
    return nb, lt


def fused_forward(x_ncl, w1, b1, w2, b2):
    """x_ncl: (N, C_IN, L) float32.  Returns (N, C_OUT, L) float32."""
    n, c, l = x_ncl.shape
    assert c == C_IN

    # Fold the two k=1 transposed convs into one 2x4 mix (exact up to f32
    # rounding of the fold).
    w = jnp.dot(w1, w2)                       # (C_IN, C_OUT)
    b = jnp.dot(b1, w2) + b2                  # (C_OUT,)
    wv = w.reshape(C_IN, C_OUT, 1)            # lane-broadcastable weights
    bv = b.reshape(C_OUT, 1)                  # lane-broadcastable bias

    # Pad L to a lane-aligned length (large L -> coarser quantum so a big tile
    # divides L_pad even for awkward lengths); slice the pad off at the end.
    quantum = 128 if l <= 32768 else 8192
    l_pad = -(-l // quantum) * quantum
    x_p = x_ncl if l_pad == l else jnp.pad(x_ncl, ((0, 0), (0, 0), (0, l_pad - l)))

    nb, lt = _choose_tiling(n, l_pad)
    grid = (n // nb, l_pad // lt)

    out = pl.pallas_call(
        _fused_kernel,
        out_shape=jax.ShapeDtypeStruct((n, C_OUT, l_pad), jnp.float32),
        grid=grid,
        in_specs=[
            pl.BlockSpec((nb, C_IN, lt), lambda i, j: (i, 0, j)),
            pl.BlockSpec((C_IN, C_OUT, 1), lambda i, j: (0, 0, 0)),
            pl.BlockSpec((C_OUT, 1), lambda i, j: (0, 0)),
        ],
        out_specs=pl.BlockSpec((nb, C_OUT, lt), lambda i, j: (i, 0, j)),
        compiler_params=pltpu.CompilerParams(
            dimension_semantics=("parallel", "parallel"),
            vmem_limit_bytes=32 * 1024 * 1024),
    )(x_p, wv, bv)

    return out if l_pad == l else out[:, :, :l]


def init_params(key):
    """Deterministic init mimicking PyTorch ConvTranspose1d default (uniform
    +/- 1/sqrt(in_channels * kernel_size)).  Weights stored as (C_in, C_out),
    i.e. torch weight[:, :, 0]."""
    k1, k2, k3, k4 = jax.random.split(key, 4)
    bound1 = 1.0 / jnp.sqrt(jnp.float32(C_IN * 1))
    bound2 = 1.0 / jnp.sqrt(jnp.float32(C_MID * 1))
    w1 = jax.random.uniform(k1, (C_IN, C_MID), jnp.float32, -bound1, bound1)
    b1 = jax.random.uniform(k2, (C_MID,), jnp.float32, -bound1, bound1)
    w2 = jax.random.uniform(k3, (C_MID, C_OUT), jnp.float32, -bound2, bound2)
    b2 = jax.random.uniform(k4, (C_OUT,), jnp.float32, -bound2, bound2)
    return w1, b1, w2, b2


def reference_forward(x_ncl, w1, b1, w2, b2):
    # Pure-JAX reference of the (un-folded) PyTorch forward semantics.
    t1 = jnp.einsum("ncl,cm->nml", x_ncl, w1) + b1[None, :, None]
    t2 = jnp.einsum("nml,mo->nol", t1, w2) + b2[None, :, None]
    return jnp.where(t2 > 0, t2, t2 * NEGATIVE_SLOPE)


if __name__ == "__main__":
    key = jax.random.PRNGKey(0)
    kp, kx = jax.random.split(key)
    w1, b1, w2, b2 = init_params(kp)

    N, L = 2, 16  # small shapes: batch=2, in_channels=2, length=16
    x = jax.random.normal(kx, (N, C_IN, L), jnp.float32)

    out = fused_forward(x, w1, b1, w2, b2)
    out = jax.block_until_ready(out)

    ref = reference_forward(x, w1, b1, w2, b2)
    assert out.shape == (N, C_OUT, L)
    assert jnp.allclose(out, ref, atol=1e-5, rtol=1e-5)

    print("KERNEL_OK")
</pallas_src>

<mosaic_0001>
module attributes {stable_mosaic.version = 11 : i64} {
  func.func @_fused_kernel(%arg0: i32, %arg1: i32, %arg2: memref<1x2x128xf32, #tpu.memory_space<vmem>>, %arg3: memref<2x4x1xf32, #tpu.memory_space<vmem>>, %arg4: memref<4x1xf32, #tpu.memory_space<vmem>>, %arg5: memref<1x4x128xf32, #tpu.memory_space<vmem>>) attributes {dimension_semantics = [#tpu.dimension_semantics<parallel>, #tpu.dimension_semantics<parallel>], iteration_bounds = array<i64: 2, 1>, scalar_prefetch = 0 : i64, scratch_operands = 0 : i64, tpu.core_type = #tpu.core_type<tc>, window_params = [{transform_indices = @transform_0, window_bounds = array<i64: 1, 2, 128>}, {pipeline_mode = #tpu.pipeline_mode<synchronous>, transform_indices = @transform_1, window_bounds = array<i64: 2, 4, 1>}, {pipeline_mode = #tpu.pipeline_mode<synchronous>, transform_indices = @transform_2, window_bounds = array<i64: 4, 1>}, {transform_indices = @transform_3, window_bounds = array<i64: 1, 4, 128>}]} {
    %c0 = arith.constant 0 : index
    %c0_0 = arith.constant 0 : index
    %c0_1 = arith.constant 0 : index
    %0 = vector.load %arg2[%c0, %c0_0, %c0_1] : memref<1x2x128xf32, #tpu.memory_space<vmem>>, vector<1x2x128xf32>
    %c0_2 = arith.constant 0 : index
    %c0_3 = arith.constant 0 : index
    %c0_4 = arith.constant 0 : index
    %1 = vector.load %arg3[%c0_2, %c0_3, %c0_4] : memref<2x4x1xf32, #tpu.memory_space<vmem>>, vector<2x4x1xf32>
    %c0_5 = arith.constant 0 : index
    %c0_6 = arith.constant 0 : index
    %2 = vector.load %arg4[%c0_5, %c0_6] : memref<4x1xf32, #tpu.memory_space<vmem>>, vector<4x1xf32>
    %3 = vector.extract_strided_slice %0 {offsets = [0, 0, 0], sizes = [1, 1, 128], strides = [1, 1, 1]} : vector<1x2x128xf32> to vector<1x1x128xf32>
    %4 = vector.extract_strided_slice %1 {offsets = [0, 0, 0], sizes = [1, 4, 1], strides = [1, 1, 1]} : vector<2x4x1xf32> to vector<1x4x1xf32>
    %5 = vector.shape_cast %4 : vector<1x4x1xf32> to vector<4x1xf32>
    %6 = vector.shape_cast %5 : vector<4x1xf32> to vector<1x4x1xf32>
    %7 = vector.broadcast %3 : vector<1x1x128xf32> to vector<1x4x128xf32>
    %8 = vector.broadcast %6 : vector<1x4x1xf32> to vector<1x4x128xf32>
    %9 = arith.mulf %7, %8 : vector<1x4x128xf32>
    %10 = vector.shape_cast %2 : vector<4x1xf32> to vector<1x4x1xf32>
    %11 = vector.broadcast %10 : vector<1x4x1xf32> to vector<1x4x128xf32>
    %12 = arith.addf %9, %11 : vector<1x4x128xf32>
    %13 = vector.extract_strided_slice %0 {offsets = [0, 1, 0], sizes = [1, 1, 128], strides = [1, 1, 1]} : vector<1x2x128xf32> to vector<1x1x128xf32>
    %14 = vector.extract_strided_slice %1 {offsets = [1, 0, 0], sizes = [1, 4, 1], strides = [1, 1, 1]} : vector<2x4x1xf32> to vector<1x4x1xf32>
    %15 = vector.shape_cast %14 : vector<1x4x1xf32> to vector<4x1xf32>
    %16 = vector.shape_cast %15 : vector<4x1xf32> to vector<1x4x1xf32>
    %17 = vector.broadcast %13 : vector<1x1x128xf32> to vector<1x4x128xf32>
    %18 = vector.broadcast %16 : vector<1x4x1xf32> to vector<1x4x128xf32>
    %19 = arith.mulf %17, %18 : vector<1x4x128xf32>
    %20 = arith.addf %12, %19 : vector<1x4x128xf32>
    %cst = arith.constant 0.000000e+00 : f32
    %21 = vector.broadcast %cst : f32 to vector<1x4x128xf32>
    %22 = arith.cmpf ogt, %20, %21 : vector<1x4x128xf32>
    %cst_7 = arith.constant -1.000000e-01 : f32
    %23 = vector.broadcast %cst_7 : f32 to vector<1x4x128xf32>
    %24 = arith.mulf %20, %23 : vector<1x4x128xf32>
    %25 = arith.select %22, %20, %24 : vector<1x4x128xi1>, vector<1x4x128xf32>
    %c0_8 = arith.constant 0 : index
    %c0_9 = arith.constant 0 : index
    %c0_10 = arith.constant 0 : index
    %26 = vector.load %arg5[%c0_8, %c0_9, %c0_10] : memref<1x4x128xf32, #tpu.memory_space<vmem>>, vector<1x4x128xf32>
    tpu.vector_store %arg5[%c0_8, %c0_9, %c0_10], %25 {strides = array<i32>} : memref<1x4x128xf32, #tpu.memory_space<vmem>>, vector<1x4x128xf32>,
    return
  }
  func.func @transform_0(%arg0: i32, %arg1: i32) -> (i32, i32, i32) {
    %c0_i32 = arith.constant 0 : i32
    %c0_i32_0 = arith.constant 0 : i32
    return %arg0, %c0_i32, %arg1 : i32, i32, i32
  }
  func.func @transform_1(%arg0: i32, %arg1: i32) -> (i32, i32, i32) {
    %c0_i32 = arith.constant 0 : i32
    %c0_i32_0 = arith.constant 0 : i32
    %c0_i32_1 = arith.constant 0 : i32
    %c0_i32_2 = arith.constant 0 : i32
    return %c0_i32, %c0_i32_0, %c0_i32_1 : i32, i32, i32
  }
  func.func @transform_2(%arg0: i32, %arg1: i32) -> (i32, i32) {
    %c0_i32 = arith.constant 0 : i32
    %c0_i32_0 = arith.constant 0 : i32
    %c0_i32_1 = arith.constant 0 : i32
    return %c0_i32, %c0_i32_0 : i32, i32
  }
  func.func @transform_3(%arg0: i32, %arg1: i32) -> (i32, i32, i32) {
    %c0_i32 = arith.constant 0 : i32
    %c0_i32_0 = arith.constant 0 : i32
    return %arg0, %c0_i32, %arg1 : i32, i32, i32
  }
}

</mosaic_0001>

<bundles_post_ra>
// kernel: tpu_custom_call.1
= control target key start
LH: loop header
LB: loop body
LE: loop exit
PB: predicated region body
PF: predicated region fallthrough
CT: control target
= control target key end

     0   :  { %8 = vsyncpa [#allocation3], 0  ;;  %s604_s0 = inlined_call_operand.vmem [shape: f32[2,2,128], index: 0, kind: input, shape index: {}]   ;;  %s605_s1 = inlined_call_operand.vmem [shape: f32[2,4,1], index: 1, kind: input, shape index: {}]   ;;  %s606_s2 = inlined_call_operand.vmem [shape: f32[4,1], index: 2, kind: input, shape index: {}]   ;;  %s607_s3 = inlined_call_operand.hbm [shape: f32[2,4,128], index: 3, kind: output, shape index: {}]  }
   0x1   :  { %10 = vsyncpa [#allocation3 + $0x1], 0  ;;  %s483_s12 = smov 0   ;;  %s485_s13 = smov 0  }
   0x2   :  { %s487_s14 = smov 0   ;;  %s489_s15 = smov 0  }
   0x3   :  { %s491_s16 = smov 0   ;;  %s493_s17 = smov 0  }
   0x4 LB: > { %s312_s18 = sadd.s32 4294967295, %s459_s17   ;;  %s313_s19 = sadd.s32 4294967294, %s459_s17   ;;  %s459_s17 = sphi %s493_s17, %s16_s17   ;;  %s455_s16 = sphi %s491_s16, %s614_s16   ;;  %s451_s15 = sphi %s489_s15, %s613_s15   ;;  %s447_s14 = sphi %s487_s14, %s612_s14   ;;  %s443_s13 = sphi %s485_s13, %s611_s13   ;;  %s439_s12 = sphi %s483_s12, %s610_s12  }
   0x5   : > { %s28_s20 = sadd.s32 1, %s455_s16  ;;  %s107_s21 = sadd.s32 1, %s447_s14 }
   0x6   : > { %p30_p0 = scmp.ge.s32.totalorder %s28_s20, 2  ;;  %p117_p1 = scmp.ne.s32.totalorder %s447_s14, %s443_s13 }
   0x7   : > { %p118_p2 = scmp.eq.s32.totalorder %s312_s18, 1  ;;  %p123_p3 = scmp.ne.s32.totalorder %s443_s13, %s439_s12 }
   0x8   : > { %s616_s20 = smov (%p30_p0, %s28_s20), 0  ;;  %p124_p5 = scmp.eq.s32.totalorder %s313_s19, 1 }
   0x9   : > { %p523_p4 = por %p118_p2, %p117_p1  ;;  %s102_s23 = ssub.s32 %s455_s16, %s616_s20 }
   0xa   : > { %p316_p6 = scmp.ge.s32.totalorder %s459_s17, 1  ;;  %p105_p7 = scmp.eq.s32.totalorder %s102_s23, 0 }
   0xb   : > { %p530_p8 = por %p124_p5, %p123_p3  ;;  %p158_p9 = scmp.lt.s32.totalorder %s459_s17, 3 }
   0xc   : > { %s536_s25 = scalar_select %p105_p7, %s447_s14, %s107_s21  }
   0xd   : > { %p159_p10 = pnand %p316_p6, %p158_p9 }
   0xe   : > { %v192_v0 = vld [vmem:[%s605_s1] sm:$0xf] (!%p159_p10)  ;;  %v193_v1 = vld [vmem:[%s605_s1 + $0x4] sm:$0xf] (!%p159_p10)  ;;  %v461_v2 = vmov (!%p159_p10), 0   ;;  %p184_p11 = scmp.lt.s32.totalorder (!%p159_p10), %s451_s15, 1  ;;  %v195_v4 = vlaneseq (!%p159_p10) }
   0xf   : > { %162 = sbr.rel (%p159_p10) target bundleno = 169 (0xa9), region = 32  ;;  %379 = vset.pattern.permute.xlu0 (!%p159_p10), %v461_v2  ;;  %380 = vset.pattern.permute.xlu1 (!%p159_p10), %v461_v2  ;;  %v194_v3 = vld [vmem:[%s606_s2] sm:$0xf] (!%p159_p10)  ;;  %s181_s10 = sand.u32 (!%p159_p10), 1, %s443_s13  }
  0x10   : > { %201 = vperm.xlu0 (!%p159_p10), %379, %v192_v0   ;;  %217 = vperm.xlu1 (!%p159_p10), %380, %v193_v1   ;;  %v196_v5 = vshrl.u32 (!%p159_p10), %v195_v4, 7  ;;  %s317_s11 = sshll.u32 (!%p159_p10), %s181_s10, 2  ;;  %s320_s18 = sshll.u32 (!%p159_p10), %s451_s15, 6 }
  0x11   : > { %s183_s19 = scalar_lea.vmem (!%p159_p10), [#allocation2], %s317_s11  ;;  %s557_s27 = scalar_lea.hbm (!%p159_p10), %s607_s3, %s320_s18 }
  0x12   : > { %v197_v6 = vsub.s32 (!%p159_p10), 0, %v196_v5  ;;  %v213_v7 = vsub.s32 (!%p159_p10), 1, %v196_v5  ;;  %s241_s21 = sshll.u32 (!%p159_p10), %s183_s19, 4  ;;  %s227_s28 = scalar_lea.sflag (!%p159_p10), [#allocation3], %s181_s10  ;;  %s559_s21 = int_to_ptr.vmem [resolvable:$true] %s241_s21 }
  0x13   : > { %s381_s29 = scalar_lea.vmem (!%p159_p10), %s559_s21, 64 }
  0x14   : > { %207 = vperm.xlu0 (!%p159_p10), %379, %v194_v3   ;;  %p382_p12 = scmp.ne.s32.totalorder (!%p159_p10), %s559_s21, %s381_s29 }
  0x16   : > { %s185_s5 = scalar_select %p184_p11, %s451_s15, 1 }
  0x17   : > { %p383_p13 = pnand %p382_p12, %p523_p4  ;;  %s462_s15 = smov [#allocation2]  }
  0x18   : > { %s318_s6 = sshll.u32 %s185_s5, 1  ;;  %s385_s30 = sshll.u32 %s462_s15, 4  ;;  %s386_s30 = int_to_ptr.vmem [resolvable:$false] %s385_s30 }
  0x19   : > { %s190_s9 = scalar_lea.vmem %s604_s0, %s318_s6  ;;  %p384_p0 = pneg %p383_p13 }
  0x1a   : > { %v191_v8 = vld [vmem:[%s190_s9] sm:$0x3]  ;;  %s387_s4 = scalar_lea.vmem %s386_s30, 128  ;;  %p388_p1 = scmp.lt.s32.totalorder %s559_s21, %s386_s30 }
  0x1b   : > { %v198_v9 = vrot.slane %v191_v8, %v197_v6  ;;  %v214_v10 = vrot.slane %v191_v8, %v213_v7  ;;  %p389_p2 = scmp.lt.s32.totalorder %s387_s4, %s381_s29 }
  0x1d   : > { %p390_p3 = por %p389_p2, %p388_p1 }
  0x1f   : > { %p391_p5 = pnand %p390_p3, %p384_p0 }
  0x8f   : > { %v202_v11 = vpop.permute.xlu0 %201  ;;  %v218_v12 = vpop.permute.xlu1 %217 }
  0x90   : > { %v204_v13 = vmul.f32 %v202_v11, %v198_v9  ;;  %v220_v14 = vmul.f32 %v218_v12, %v214_v10 }
  0x93   : > { %v208_v15 = vpop.permute.xlu0 %207 }
  0x94   : > { %v210_v16 = vadd.f32 %v208_v15, %v204_v13 }
  0x96   : > { %v221_v17 = vadd.f32 %v220_v14, %v210_v16 }
  0x98   : > { %v223_v18 = vmul.f32 -0.1, %v221_v17  ;;  %vm222_vm0 = vcmp.gt.f32.partialorder %v221_v17, 0.0 }
  0x9a   : > { %v224_v19 = vsel %vm222_vm0, %v221_v17, %v223_v18 }
  0x9b   : > { %225 = vst [vmem:[%s183_s19] sm:$0xf] %v224_v19 }
  0x9c   : > { %394 = shalt.err (!%p391_p5)
}
  0x9d   : > { %s395_s5 = scalar_lea.hbm %s557_s27, 64  ;;  %s399_s8 = scalar_lea.hbm %s607_s3, 128 }
  0x9e   : > { %p396_p6 = scmp.ne.s32.totalorder %s557_s27, %s395_s5  ;;  %p400_p10 = scmp.lt.u32.totalorder %s557_s27, %s607_s3 }
  0x9f   : > { %p401_p11 = scmp.lt.u32.totalorder %s399_s8, %s395_s5  ;;  %p403_p13 = scmp.lt.u32.totalorder %s395_s5, %s557_s27 }
  0xa0   : > { %p397_p7 = pnand %p396_p6, %p523_p4 }
  0xa1   : > { %p402_p12 = por %p401_p11, %p400_p10 }
  0xa2   : > { %p398_p9 = pneg %p397_p7 }
  0xa3   : > { %p404_p0 = por %p403_p13, %p402_p12 }
  0xa5   : > { %p405_p1 = pnand %p404_p0, %p398_p9 }
  0xa7   : > { %408 = shalt.err (!%p405_p1)
}
  0xa8   : > { %323 = dma.vmem_to_hbm [thread:$0]  (%p523_p4), %s559_s21, 64, %s557_s27, %s227_s28  }
  0xa9 PF: > { %p329_p2 = scmp.ge.s32.totalorder %s459_s17, 2  ;;  %s253_s11 = sand.u32 1, %s439_s12  }
  0xaa   : > { %s254_s18 = scalar_lea.sflag [#allocation3], %s253_s11 }
  0xab   : > { %p326_p3 = pnand %p329_p2, %p530_p8 }
  0xad   : > { %434 = dma.done.wait (!%p326_p3), %s254_s18, 64  }
  0xae   : > { %436 = vsyncadd (!%p326_p3), %s254_s18, 4294967232  ;;  %s16_s17 = sadd.s32 1, %s459_s17   ;;  %s610_s12 = smov %s443_s13 }
  0xaf   : > { %p13_p5 = scmp.ge.s32.totalorder %s16_s17, 4   ;;  %s611_s13 = smov %s447_s14 }
  0xb0   : > { %s612_s14 = smov %s536_s25  ;;  %s613_s15 = smov %s455_s16 }
  0xb1   : > { %s614_s16 = smov %s616_s20  ;;  %15 = sbr.rel (!%p13_p5) target bundleno = 4 (0x4), region = 67 }
  0xb8   :  { %259 = vsyncpa [#allocation3], 1 }
  0xb9   :  { %261 = vsyncpa [#allocation3 + $0x1], 1 }

</bundles_post_ra>
